<compile_context>
chip_gen: v7x
topology: tpu7x:2x2x1
jax: 0.10.0
libtpu: 0.0.40
codegen_flags: <defaults>
</compile_context>

<pallas_src>
import jax
import jax.numpy as jnp
from jax import lax
from jax.experimental import pallas as pl
from jax.experimental.pallas import tpu as pltpu


def _conv_linear1_kernel(x_ref, ws_ref, w1_ref, b1_ref, h_ref, acc_ref):
    # x_ref : (TB, C, TK) f32     ws_ref: (1, C, 1) f32
    # w1_ref: (TK, hidden) bf16   b1_ref: (1, hidden) f32 (conv bias folded in)
    # h_ref : (TB, hidden) bf16   acc_ref: (TB, hidden) f32 scratch
    k = pl.program_id(1)

    @pl.when(k == 0)
    def _():
        acc_ref[...] = jnp.zeros_like(acc_ref)

    TB, C, TK = x_ref.shape

    # 1x1 conv == weighted sum over channels.  Accumulate in C-chunks (sublane
    # groups) so we never hold the full (TB, C, TK) broadcast temp in vregs.
    CC = 8 if C % 8 == 0 else C          # chunk size (compile-time constant)
    y = jnp.zeros((TB, TK), jnp.float32)
    for c0 in range(0, C, CC):           # static slices -> no lowering risk
        xs = x_ref[:, c0:c0 + CC, :]     # (TB, CC, TK)
        wc = ws_ref[:, c0:c0 + CC, :]    # (1, CC, 1)
        y = y + jnp.sum(xs * wc, axis=1)

    # Linear(HW -> hidden), K-tiled accumulation on the MXU (bf16 in, f32 acc).
    acc_ref[...] += jnp.dot(y.astype(jnp.bfloat16), w1_ref[...],
                            preferred_element_type=jnp.float32)

    @pl.when(k == pl.num_programs(1) - 1)
    def _():
        h_ref[...] = jnp.maximum(acc_ref[...] + b1_ref[...], 0.0).astype(h_ref.dtype)


def _linear2_kernel(h_ref, w2_ref, b2_ref, o_ref):
    # h_ref: (TB, hidden) bf16   w2_ref: (hidden, TN) bf16
    # b2_ref: (1, TN) f32        o_ref : (TB, TN)
    o = jnp.dot(h_ref[...], w2_ref[...],
                preferred_element_type=jnp.float32) + b2_ref[...]
    o_ref[...] = o.astype(o_ref.dtype)


def _pick_tile(total, cap=512):
    """Largest multiple of 128 <= cap that divides `total` (total % 128 == 0)."""
    for t in range(min(cap, total), 0, -128):
        if total % t == 0:
            return t
    return total


def spatial_attention_layer(x, params):
    """x: (B, C, H, W) float32. Returns (B, 1, H, W)."""
    ws, bs, w1t, b1, w2t, b2 = params
    B, C, H, W = x.shape
    HW = H * W
    hidden = w1t.shape[1]

    # --- wrapper-side layout / algebra (cheap XLA ops, done once) -----------
    # Fold the scalar conv bias into the first Linear bias (exact: ReLU comes
    # after Linear1):  (y + bs) @ W1 = y @ W1 + bs * colsum(W1).
    b1_eff = (b1 + bs[0, 0] * jnp.sum(w1t, axis=0, keepdims=True)).astype(jnp.float32)

    # Pad HW to a multiple of 128 (lane-dense loads/stores).  Zero padding is
    # exact: padded x lanes meet zero w1 rows; padded w2 cols give zero output
    # cols which are sliced off.
    HWp = ((HW + 127) // 128) * 128
    pad = HWp - HW

    x3 = x.reshape(B, C, HW)
    if pad:
        x3 = jnp.pad(x3, ((0, 0), (0, 0), (0, pad)))
        w1t = jnp.pad(w1t, ((0, pad), (0, 0)))
        w2t = jnp.pad(w2t, ((0, 0), (0, pad)))
        b2 = jnp.pad(b2, ((0, 0), (0, pad)))

    ws3 = ws.reshape(1, C, 1).astype(jnp.float32)   # pre-shaped for broadcast
    w1b = w1t.astype(jnp.bfloat16)                  # weight DMA in bf16
    w2b = w2t.astype(jnp.bfloat16)
    b2f = b2.astype(jnp.float32)

    # --- tiling --------------------------------------------------------------
    TB = 8 if B % 8 == 0 else B
    TK = _pick_tile(HWp)        # K tile of Linear1 (also the conv lane tile)
    TN = _pick_tile(HWp)        # N tile of Linear2 (output lane tile)
    nb, nk, nn = B // TB, HWp // TK, HWp // TN

    vmem_cap = 48 * 1024 * 1024   # under v7x's 64 MiB physical VMEM

    # --- kernel 1: conv + Linear1 + ReLU  ->  h (B, hidden) bf16 -------------
    cost1 = pl.CostEstimate(
        flops=int(2 * B * C * HWp + 2 * B * HWp * hidden),
        transcendentals=0,
        bytes_accessed=int(x3.size * 4 + w1b.size * 2 + ws3.size * 4
                           + b1_eff.size * 4 + B * hidden * 2))
    h = pl.pallas_call(
        _conv_linear1_kernel,
        out_shape=jax.ShapeDtypeStruct((B, hidden), jnp.bfloat16),
        grid_spec=pltpu.PrefetchScalarGridSpec(
            num_scalar_prefetch=0,
            grid=(nb, nk),
            in_specs=[
                pl.BlockSpec((TB, C, TK), lambda b, k: (b, 0, k)),
                pl.BlockSpec((1, C, 1), lambda b, k: (0, 0, 0)),
                pl.BlockSpec((TK, hidden), lambda b, k: (k, 0)),
                pl.BlockSpec((1, hidden), lambda b, k: (0, 0)),
            ],
            out_specs=pl.BlockSpec((TB, hidden), lambda b, k: (b, 0)),
            scratch_shapes=[pltpu.VMEM((TB, hidden), jnp.float32)],
        ),
        compiler_params=pltpu.CompilerParams(
            dimension_semantics=("parallel", "arbitrary"),
            vmem_limit_bytes=vmem_cap),
        cost_estimate=cost1,
    )(x3, ws3, w1b, b1_eff)

    # --- kernel 2: Linear2  ->  o (B, HWp) ------------------------------------
    cost2 = pl.CostEstimate(
        flops=int(2 * B * hidden * HWp),
        transcendentals=0,
        bytes_accessed=int(h.size * 2 + w2b.size * 2 + b2f.size * 4 + B * HWp * 4))
    o2 = pl.pallas_call(
        _linear2_kernel,
        out_shape=jax.ShapeDtypeStruct((B, HWp), x.dtype),
        grid_spec=pltpu.PrefetchScalarGridSpec(
            num_scalar_prefetch=0,
            grid=(nb, nn),
            in_specs=[
                pl.BlockSpec((TB, hidden), lambda b, n: (b, 0)),
                pl.BlockSpec((hidden, TN), lambda b, n: (0, n)),
                pl.BlockSpec((1, TN), lambda b, n: (0, n)),
            ],
            out_specs=pl.BlockSpec((TB, TN), lambda b, n: (b, n)),
        ),
        compiler_params=pltpu.CompilerParams(
            dimension_semantics=("parallel", "parallel"),
            vmem_limit_bytes=vmem_cap),
        cost_estimate=cost2,
    )(h, w2b, b2f)

    return o2[:, :HW].reshape(B, 1, H, W)


def init_params(key, channel, size, reduction=8, dtype=jnp.float32):
    """Deterministic synthetic parameters matching the module's shapes."""
    hw = size * size
    hidden = hw // reduction
    k0, k1, k2, k3, k4, k5 = jax.random.split(key, 6)
    # Conv2d(channel, 1, 1): weight (1, C, 1, 1) -> stored as (1, C); bias (1,)
    ws = jax.random.normal(k0, (1, channel), dtype) * 0.1
    bs = jax.random.normal(k1, (1, 1), dtype) * 0.1
    # Linear(hw, hidden): PyTorch weight (hidden, hw); store transposed (hw, hidden)
    w1t = jax.random.normal(k2, (hw, hidden), dtype) * 0.05
    b1 = jax.random.normal(k3, (1, hidden), dtype) * 0.05
    # Linear(hidden, hw): store transposed (hidden, hw)
    w2t = jax.random.normal(k4, (hidden, hw), dtype) * 0.05
    b2 = jax.random.normal(k5, (1, hw), dtype) * 0.05
    return ws, bs, w1t, b1, w2t, b2


def _reference(x, params):
    ws, bs, w1t, b1, w2t, b2 = params
    B, C, H, W = x.shape
    y = jnp.einsum('bchw,c->bhw', x, ws[0]).reshape(B, H * W) + bs[0, 0]
    h = jnp.maximum(y @ w1t + b1, 0.0)
    o = h @ w2t + b2
    return o.reshape(B, 1, H, W)


if __name__ == "__main__":
    B, C, SIZE, REDUCTION = 2, 4, 16, 8
    key = jax.random.PRNGKey(0)
    kx, kp = jax.random.split(key)
    x = jax.random.normal(kx, (B, C, SIZE, SIZE), jnp.float32)
    params = init_params(kp, C, SIZE, REDUCTION)

    out = spatial_attention_layer(x, params)
    out = jax.block_until_ready(out)

    ref = _reference(x, params)
    assert out.shape == (B, 1, SIZE, SIZE)
    # bf16 weight path -> slightly looser tolerance than pure f32.
    assert jnp.allclose(out, ref, atol=1e-2, rtol=1e-2), (
        float(jnp.max(jnp.abs(out - ref))))
    print("KERNEL_OK")
</pallas_src>

<mosaic_0001>
module attributes {stable_mosaic.version = 11 : i64} {
  func.func @_conv_linear1_kernel(%arg0: i32, %arg1: i32, %arg2: memref<2x4x256xf32, #tpu.memory_space<vmem>>, %arg3: memref<1x4x1xf32, #tpu.memory_space<vmem>>, %arg4: memref<256x32xbf16, #tpu.memory_space<vmem>>, %arg5: memref<1x32xf32, #tpu.memory_space<vmem>>, %arg6: memref<2x32xbf16, #tpu.memory_space<vmem>>, %arg7: memref<2x32xf32, #tpu.memory_space<vmem>>) attributes {dimension_semantics = [#tpu.dimension_semantics<parallel>, #tpu.dimension_semantics<arbitrary>], iteration_bounds = array<i64: 1, 1>, scalar_prefetch = 0 : i64, scratch_operands = 1 : i64, tpu.core_type = #tpu.core_type<tc>, window_params = [{transform_indices = @transform_0, window_bounds = array<i64: 2, 4, 256>}, {pipeline_mode = #tpu.pipeline_mode<synchronous>, transform_indices = @transform_1, window_bounds = array<i64: 1, 4, 1>}, {transform_indices = @transform_2, window_bounds = array<i64: 256, 32>}, {pipeline_mode = #tpu.pipeline_mode<synchronous>, transform_indices = @transform_3, window_bounds = array<i64: 1, 32>}, {transform_indices = @transform_4, window_bounds = array<i64: 2, 32>}]} {
    %c0_i32 = arith.constant 0 : i32
    %0 = arith.cmpi eq, %arg1, %c0_i32 : i32
    %1 = arith.extui %0 : i1 to i32
    %c0_i32_0 = arith.constant 0 : i32
    %2 = arith.cmpi ne, %1, %c0_i32_0 : i32
    scf.if %2 {
      %cst_16 = arith.constant 0.000000e+00 : f32
      %19 = vector.broadcast %cst_16 : f32 to vector<2x32xf32>
      %c0_17 = arith.constant 0 : index
      %c0_18 = arith.constant 0 : index
      %20 = vector.load %arg7[%c0_17, %c0_18] : memref<2x32xf32, #tpu.memory_space<vmem>>, vector<2x32xf32>
      tpu.vector_store %arg7[%c0_17, %c0_18], %19 {strides = array<i32>} : memref<2x32xf32, #tpu.memory_space<vmem>>, vector<2x32xf32>,
    } else {
    }
    %cst = arith.constant 0.000000e+00 : f32
    %3 = vector.broadcast %cst : f32 to vector<2x256xf32>
    %c0 = arith.constant 0 : index
    %c0_1 = arith.constant 0 : index
    %c0_2 = arith.constant 0 : index
    %4 = vector.load %arg2[%c0, %c0_1, %c0_2] : memref<2x4x256xf32, #tpu.memory_space<vmem>>, vector<2x4x256xf32>
    %c0_3 = arith.constant 0 : index
    %c0_4 = arith.constant 0 : index
    %c0_5 = arith.constant 0 : index
    %5 = vector.load %arg3[%c0_3, %c0_4, %c0_5] : memref<1x4x1xf32, #tpu.memory_space<vmem>>, vector<1x4x1xf32>
    %6 = vector.broadcast %5 : vector<1x4x1xf32> to vector<2x4x256xf32>
    %7 = arith.mulf %4, %6 : vector<2x4x256xf32>
    %cst_6 = arith.constant dense<0.000000e+00> : vector<2x256xf32>
    %8 = vector.multi_reduction <add>, %7, %cst_6 [1] : vector<2x4x256xf32> to vector<2x256xf32>
    %9 = arith.addf %3, %8 : vector<2x256xf32>
    %c0_7 = arith.constant 0 : index
    %c0_8 = arith.constant 0 : index
    %10 = vector.load %arg7[%c0_7, %c0_8] : memref<2x32xf32, #tpu.memory_space<vmem>>, vector<2x32xf32>
    %11 = arith.truncf %9 : vector<2x256xf32> to vector<2x256xbf16>
    %c0_9 = arith.constant 0 : index
    %c0_10 = arith.constant 0 : index
    %12 = vector.load %arg4[%c0_9, %c0_10] : memref<256x32xbf16, #tpu.memory_space<vmem>>, vector<256x32xbf16>
    %cst_11 = arith.constant dense<0.000000e+00> : vector<2x32xf32>
    %13 = tpu.matmul %11, %12, %cst_11 {dimension_numbers = #tpu.dot_dimension_numbers<[1], [0], [0], [1], [0, 0, 1, 1], [], []>} : vector<2x256xbf16>, vector<256x32xbf16>, vector<2x32xf32> -> vector<2x32xf32>
    %14 = arith.addf %10, %13 : vector<2x32xf32>
    %c0_12 = arith.constant 0 : index
    %c0_13 = arith.constant 0 : index
    %15 = vector.load %arg7[%c0_12, %c0_13] : memref<2x32xf32, #tpu.memory_space<vmem>>, vector<2x32xf32>
    tpu.vector_store %arg7[%c0_12, %c0_13], %14 {strides = array<i32>} : memref<2x32xf32, #tpu.memory_space<vmem>>, vector<2x32xf32>,
    %c0_i32_14 = arith.constant 0 : i32
    %16 = arith.cmpi eq, %arg1, %c0_i32_14 : i32
    %17 = arith.extui %16 : i1 to i32
    %c0_i32_15 = arith.constant 0 : i32
    %18 = arith.cmpi ne, %17, %c0_i32_15 : i32
    scf.if %18 {
      %c0_16 = arith.constant 0 : index
      %c0_17 = arith.constant 0 : index
      %19 = vector.load %arg7[%c0_16, %c0_17] : memref<2x32xf32, #tpu.memory_space<vmem>>, vector<2x32xf32>
      %c0_18 = arith.constant 0 : index
      %c0_19 = arith.constant 0 : index
      %20 = vector.load %arg5[%c0_18, %c0_19] : memref<1x32xf32, #tpu.memory_space<vmem>>, vector<1x32xf32>
      %21 = vector.broadcast %20 : vector<1x32xf32> to vector<2x32xf32>
      %22 = arith.addf %19, %21 : vector<2x32xf32>
      %cst_20 = arith.constant 0.000000e+00 : f32
      %23 = vector.broadcast %cst_20 : f32 to vector<2x32xf32>
      %24 = arith.maximumf %22, %23 : vector<2x32xf32>
      %25 = arith.truncf %24 : vector<2x32xf32> to vector<2x32xbf16>
      %c0_21 = arith.constant 0 : index
      %c0_22 = arith.constant 0 : index
      %26 = vector.load %arg6[%c0_21, %c0_22] : memref<2x32xbf16, #tpu.memory_space<vmem>>, vector<2x32xbf16>
      tpu.vector_store %arg6[%c0_21, %c0_22], %25 {strides = array<i32>} : memref<2x32xbf16, #tpu.memory_space<vmem>>, vector<2x32xbf16>,
    } else {
    }
    return
  }
  func.func @transform_0(%arg0: i32, %arg1: i32) -> (i32, i32, i32) {
    %c0_i32 = arith.constant 0 : i32
    %c0_i32_0 = arith.constant 0 : i32
    return %arg0, %c0_i32, %arg1 : i32, i32, i32
  }
  func.func @transform_1(%arg0: i32, %arg1: i32) -> (i32, i32, i32) {
    %c0_i32 = arith.constant 0 : i32
    %c0_i32_0 = arith.constant 0 : i32
    %c0_i32_1 = arith.constant 0 : i32
    %c0_i32_2 = arith.constant 0 : i32
    return %c0_i32, %c0_i32_0, %c0_i32_1 : i32, i32, i32
  }
  func.func @transform_2(%arg0: i32, %arg1: i32) -> (i32, i32) {
    %c0_i32 = arith.constant 0 : i32
    %c0_i32_0 = arith.constant 0 : i32
    return %arg1, %c0_i32 : i32, i32
  }
  func.func @transform_3(%arg0: i32, %arg1: i32) -> (i32, i32) {
    %c0_i32 = arith.constant 0 : i32
    %c0_i32_0 = arith.constant 0 : i32
    %c0_i32_1 = arith.constant 0 : i32
    return %c0_i32, %c0_i32_0 : i32, i32
  }
  func.func @transform_4(%arg0: i32, %arg1: i32) -> (i32, i32) {
    %c0_i32 = arith.constant 0 : i32
    %c0_i32_0 = arith.constant 0 : i32
    return %arg0, %c0_i32 : i32, i32
  }
}

</mosaic_0001>

<bundles_post_ra>
// kernel: tpu_custom_call.1
= control target key start
LH: loop header
LB: loop body
LE: loop exit
PB: predicated region body
PF: predicated region fallthrough
CT: control target
= control target key end

     0   :  { %v386_v2 = vmov 0   ;;  %s487_s0 = inlined_call_operand.vmem [shape: f32[2,4,256], index: 0, kind: input, shape index: {}]   ;;  %s488_s1 = inlined_call_operand.vmem [shape: f32[1,4,1], index: 1, kind: input, shape index: {}]   ;;  %s489_s2 = inlined_call_operand.vmem [shape: bf16[256,32], index: 2, kind: input, shape index: {}]   ;;  %s490_s3 = inlined_call_operand.vmem [shape: f32[1,32], index: 3, kind: input, shape index: {}]   ;;  %s491_s4 = inlined_call_operand.hbm [shape: bf16[2,32], index: 4, kind: output, shape index: {}]  }
   0x1   :  { %v27_v0 = vld [vmem:[%s488_s1] sm:$0xf]  ;;  %345 = vset.pattern.permute.xlu0 %v386_v2  ;;  %v348_v4 = vld [vmem:[%s489_s2 + $0x48] sm:$0xff]   ;;  %v350_v6 = vld [vmem:[%s489_s2 + $0x50] sm:$0xff]  }
   0x2   :  { %v346_v1 = vld [vmem:[%s489_s2 + $0x40] sm:$0xff]   ;;  %30 = vperm.xlu0 %345, %v27_v0   ;;  %v349_v5 = vld [vmem:[%s489_s2 + $0x8] sm:$0xff]   ;;  %v351_v7 = vld [vmem:[%s489_s2 + $0x10] sm:$0xff]  }
   0x3   :  { %319 = vmatprep.subr.bf16.mxu0 %v346_v1  ;;  %v347_v3 = vld [vmem:[%s489_s2] sm:$0xff]   ;;  %v352_v8 = vld [vmem:[%s489_s2 + $0x58] sm:$0xff]  }
   0x4   :  { %320 = vmatpush3.bf16.msra.mxu0 %v347_v3  ;;  %v353_v9 = vld [vmem:[%s489_s2 + $0x18] sm:$0xff]   ;;  %v354_v10 = vld [vmem:[%s489_s2 + $0x60] sm:$0xff]  }
   0x5   :  { %321 = vmatprep.subr.bf16.mxu0 %v348_v4 }
   0x8   :  { %322 = vmatpush3.bf16.msra.mxu0 %v349_v5 }
   0x9   :  { %323 = vmatprep.subr.bf16.mxu0 %v350_v6 }
   0xc   :  { %324 = vmatpush3.bf16.msra.mxu0 %v351_v7 }
   0xd   :  { %325 = vmatprep.subr.bf16.mxu0 %v352_v8 }
   0xe   :  { %9 = vsyncpa [#allocation4], 0  ;;  %v355_v11 = vld [vmem:[%s489_s2 + $0x20] sm:$0xff]   ;;  %v356_v12 = vld [vmem:[%s489_s2 + $0x68] sm:$0xff]   ;;  %v387_v18 = vmov 839922192   ;;  %v35_v20 = vlaneseq }
   0xf   :  { %v357_v13 = vld [vmem:[%s489_s2 + $0x28] sm:$0xff]   ;;  %v358_v14 = vld [vmem:[%s489_s2 + $0x70] sm:$0xff]   ;;  %v360_v16 = vld [vmem:[%s489_s2 + $0x78] sm:$0xff]   ;;  %v33_v19 = vunpack.c.l.s4 %v387_v18  ;;  %vm48_vm0 = vcmask 1043456   ;;  %vm126_vm1 = vcmask 1041409   ;;  %vm23_vm2 = vcmask 254976  }
  0x10   :  { %326 = vmatpush3.bf16.msra.mxu0 %v353_v9  ;;  %v359_v15 = vld [vmem:[%s489_s2 + $0x30] sm:$0xff]   ;;  %v361_v17 = vld [vmem:[%s489_s2 + $0x38] sm:$0xff]   ;;  %v36_v22 = vshrl.u32 %v35_v20, 7  ;;  %v25_v25 = vld [vmem:[%s487_s0] sm:$0xff]  ;;  %v388_v8 = vmov 0.0   ;;  %s389_s25 = smov [#allocation3]  }
  0x11   :  { %327 = vmatprep.subr.bf16.mxu0 %v354_v10  ;;  %v34_v21 = vunpack.c.0.s8 %v33_v19  ;;  %v26_v26 = vld [vmem:[%s487_s0 + $0x8] sm:$0xff]  ;;  %24 = vst.msk [vmem:[#allocation2] sm:$0x3] %vm23_vm2, %v388_v8  ;;  %s294_s26 = sshll.u32 %s389_s25, 4  ;;  %vm286_vm3 = vcmask 253952   ;;  %s295_s26 = int_to_ptr.vmem [resolvable:$true] %s294_s26 }
  0x12   :  { %s362_s27 = scalar_lea.vmem %s295_s26, 16  ;;  %s366_s28 = scalar_lea.vmem %s295_s26, 32 }
  0x13   :  { %v37_v23 = vsub.s32 %v34_v21, %v36_v22  ;;  %p363_p0 = scmp.ne.s32.totalorder %s295_s26, %s362_s27  ;;  %p367_p1 = scmp.lt.s32.totalorder %s295_s26, %s295_s26 }
  0x14   :  { %328 = vmatpush3.bf16.msra.mxu0 %v355_v11  ;;  %p368_p2 = scmp.lt.s32.totalorder %s366_s28, %s362_s27 }
  0x15   :  { %329 = vmatprep.subr.bf16.mxu0 %v356_v12 }
  0x16   :  { %p369_p3 = por %p368_p2, %p367_p1 }
  0x18   :  { %330 = vmatpush3.bf16.msra.mxu0 %v357_v13  ;;  %v81_v10 = vld [vmem:[#allocation2] sm:$0x3]  ;;  %p370_p4 = pnand %p369_p3, %p363_p0 }
  0x19   :  { %331 = vmatprep.subr.bf16.mxu0 %v358_v14 }
  0x1c   :  { %332 = vmatpush3.bf16.msra.mxu0 %v359_v15 }
  0x1d   :  { %333 = vmatprep.subr.bf16.mxu0 %v360_v16  ;;  %v318_v16 = vld [vmem:[%s490_s3] ss:$0 sm:$0xff] }
  0x20   :  { %334 = vmatpush3.bf16.msra.mxu0 %v361_v17 }
  0x81   :  { %v31_v24 = vpop.permute.xlu0 %30 }
  0x82   :  { %v38_v27 = vrot.slane %v31_v24, %v37_v23 }
  0x84   :  { %v40_v28 = vmul.f32 %v38_v27, %v25_v25  ;;  %v41_v29 = vmul.f32 %v38_v27, %v26_v26 }
  0x86   :  { %v44_v30 = vcombine.high %v40_v28, %v40_v28  ;;  %v45_v31 = vcombine.high %v41_v29, %v41_v29  ;;  %v49_v32 = vsel %vm48_vm0, %v40_v28, 0.0  ;;  %v63_v33 = vsel %vm48_vm0, %v41_v29, 0.0 }
  0x87   :  { %v50_v34 = vrot.slane %v49_v32, 4  ;;  %v64_v35 = vrot.slane %v63_v33, 4 }
  0x88   :  { %v56_v36 = vsel %vm48_vm0, %v44_v30, 0.0  ;;  %v70_v37 = vsel %vm48_vm0, %v45_v31, 0.0 }
  0x89   :  { %v51_v38 = vadd.f32 %v50_v34, %v49_v32  ;;  %v57_v39 = vrot.slane %v56_v36, 4  ;;  %v65_v40 = vadd.f32 %v64_v35, %v63_v33  ;;  %v71_v41 = vrot.slane %v70_v37, 4 }
  0x8b   :  { %v52_v42 = vrot.slane %v51_v38, 2  ;;  %v58_v43 = vadd.f32 %v57_v39, %v56_v36  ;;  %v66_v44 = vrot.slane %v65_v40, 2  ;;  %v72_v45 = vadd.f32 %v71_v41, %v70_v37 }
  0x8d   :  { %v53_v46 = vadd.f32 %v52_v42, %v51_v38  ;;  %v59_v47 = vrot.slane %v58_v43, 2  ;;  %v67_v48 = vadd.f32 %v66_v44, %v65_v40  ;;  %v73_v49 = vrot.slane %v72_v45, 2 }
  0x8f   :  { %v54_v50 = vrot.slane %v53_v46, 1  ;;  %v68_v51 = vrot.slane %v67_v48, 1  ;;  %v60_v52 = vadd.f32 %v59_v47, %v58_v43  ;;  %v74_v53 = vadd.f32 %v73_v49, %v72_v45 }
  0x91   :  { %v55_v54 = vadd.f32 %v54_v50, %v53_v46  ;;  %v69_v55 = vadd.f32 %v68_v51, %v67_v48  ;;  %v61_v56 = vrot.slane %v60_v52, 1  ;;  %v75_v57 = vrot.slane %v74_v53, 1 }
  0x93   :  { %v62_v58 = vadd.f32 %v61_v56, %v60_v52  ;;  %v76_v59 = vadd.f32 %v75_v57, %v74_v53  ;;  %v82_v60 = vpack.c.bf16 %v55_v54, %v55_v54  ;;  %v84_v61 = vpack.c.bf16 %v69_v55, %v69_v55 }
  0x95   :  { %v83_v62 = vpack.c.bf16 %v62_v58, %v62_v58  ;;  %v85_v63 = vpack.c.bf16 %v76_v59, %v76_v59  ;;  %v122_v0 = vunpack.c.l.b16 %v82_v60  ;;  %v124_v1 = vunpack.c.l.b16 %v84_v61 }
  0x97   :  { %v123_v2 = vunpack.c.l.b16 %v83_v62  ;;  %v125_v3 = vunpack.c.l.b16 %v85_v63  ;;  %v127_v4 = vsel %vm126_vm1, %v124_v1, %v122_v0 }
  0x98   :  { %v129_v7 = vpack.c.b16 %v127_v4, %v127_v4 }
  0x99   :  { %v128_v5 = vsel %vm126_vm1, %v125_v3, %v123_v2 }
  0x9a   :  { %v130_v6 = vpack.c.b16 %v128_v5, %v128_v5 }
  0x9c   :  { %261 = vmatprep.mubr.bf16.mxu0 %v130_v6 }
  0x9d   :  { %262 = vmatmul.mubr.bf16.vlgmr.msra.gmra.mrb[0].mxu0 %v129_v7 }
 0x170   :  { %v335_v9 = vpop.f32.mrb[0].mxu0 }
 0x171   :  { %v336_v11 = vpop.f32.mrb[1].mxu0 }
 0x172   :  { %v337_v12 = vadd.f32 %v336_v11, %v335_v9  ;;  %v338_v13 = vpop.f32.mrb[2].mxu0 }
 0x173   :  { %v339_v14 = vpop.f32.mrb[3].mxu0 }
 0x174   :  { %v269_v15 = vadd.f32 %v337_v12, %v81_v10 }
 0x176   :  { %271 = vst.msk [vmem:[#allocation2] sm:$0x3] %vm23_vm2, %v269_v15 }
 0x17d   :  { %v275_v17 = vld [vmem:[#allocation2] sm:$0x3] }
 0x17e   :  { %v283_v18 = vadd.f32 %v318_v16, %v275_v17 }
 0x180   :  { %v284_v19 = vmax.f32 %v283_v18, 0.0 }
 0x182   :  { %v285_v20 = vpack.c.bf16 %v284_v19, %v284_v19 }
 0x184   :  { %287 = vst.msk [vmem:[#allocation3] sm:$0x1] %vm286_vm3, %v285_v20 }
 0x185   :  { %373 = shalt.err (!%p370_p4)
}
 0x186   :  { %s374_s3 = scalar_lea.hbm %s491_s4, 16 }
 0x187   :  { %p375_p5 = scmp.ne.s32.totalorder %s491_s4, %s374_s3  ;;  %p378_p6 = scmp.lt.u32.totalorder %s374_s3, %s491_s4 }
 0x189   :  { %p380_p7 = pnand %p378_p6, %p375_p5 }
 0x18b   :  { %383 = shalt.err (!%p380_p7)
}
 0x18c   :  { %297 = dma.vmem_to_hbm [thread:$0]  %s295_s26, 16, %s491_s4, [#allocation4]  }
 0x18d   :  { %384 = dma.done.wait [#allocation4], 16  }
 0x18e   :  { %385 = vsyncadd [#allocation4], 4294967280 }
 0x18f   :  { %301 = vsyncpa [#allocation4], 1 }

</bundles_post_ra>
